<compile_context>
chip_gen: v7x
topology: tpu7x:2x2x1
jax: 0.10.0
libtpu: 0.0.40
codegen_flags: <defaults>
</compile_context>

<pallas_src>
import jax
import jax.numpy as jnp
from jax import lax
from jax.experimental import pallas as pl
from jax.experimental.pallas import tpu as pltpu

EPS = 1e-5


def _round_up(v, m):
    return ((v + m - 1) // m) * m


def _pad_axis(x, target, axis, value=0.0):
    pad = target - x.shape[axis]
    if pad == 0:
        return x
    widths = [(0, 0)] * x.ndim
    widths[axis] = (0, pad)
    return jnp.pad(x, widths, constant_values=value)


def _bn_prelu(h, gamma, beta, a):
    # BatchNorm1d (training mode), fused one-pass variance + folded scale.
    mean = jnp.mean(h, axis=0, keepdims=True)
    ex2 = jnp.mean(h * h, axis=0, keepdims=True)
    var = ex2 - mean * mean
    scale = gamma * lax.rsqrt(var + EPS)          # EUP rsqrt
    h = (h - mean) * scale + beta
    # PReLU
    return jnp.where(h >= 0, h, a * h)


def net_kernel(x_ref, w1_ref, p1_ref, w2_ref, p2_ref, out_ref):
    i = pl.program_id(0)

    # First grid step: load the network input into the resident output tile,
    # which then serves as the carried activation across blocks.
    @pl.when(i == 0)
    def _():
        out_ref[...] = x_ref[...]

    x = out_ref[...]                                            # (N, Dp) f32

    # ---- Linear(dim, 2*dim): weights pre-transposed to (Dp, D2p) -> no .T
    w1 = w1_ref[...]                                            # (Dp, D2p)
    p1 = p1_ref[...]                                            # (4, D2p): b, gamma, beta, a
    h = jnp.dot(x, w1, preferred_element_type=jnp.float32)      # (N, D2p)
    h = h + p1[0:1]
    h = _bn_prelu(h, p1[1:2], p1[2:3], p1[3:4])

    # ---- Linear(2*dim, dim): weights pre-transposed to (D2p, Dp)
    w2 = w2_ref[...]                                            # (D2p, Dp)
    p2 = p2_ref[...]                                            # (4, Dp)
    h2 = jnp.dot(h, w2, preferred_element_type=jnp.float32)     # (N, Dp)
    h2 = h2 + p2[0:1]
    h2 = _bn_prelu(h2, p2[1:2], p2[2:3], p2[3:4])

    # ---- residual connection; result stays resident for the next block.
    out_ref[...] = x + h2


def _pack_params(params, d_pad, d2_pad):
    """Layout plumbing (outside the kernel): transpose, pad, pack."""
    # Weights: (nb, out, in) -> (nb, in, out), zero-padded to lane-dense tiles.
    w1t = jnp.swapaxes(params["w1"], 1, 2).astype(jnp.float32)   # (nb, D, 2D)
    w1t = _pad_axis(_pad_axis(w1t, d_pad, 1), d2_pad, 2)
    w2t = jnp.swapaxes(params["w2"], 1, 2).astype(jnp.float32)   # (nb, 2D, D)
    w2t = _pad_axis(_pad_axis(w2t, d2_pad, 1), d_pad, 2)

    # Pack [bias, gamma, beta, prelu_a] into one (nb, 4, C_pad) array per Linear.
    # Padding values chosen so padded channels stay exactly zero:
    #   bias pad = 0, beta pad = 0 (gamma / slope pads are multiplied by zero).
    def pack_vecs(b, g, be, a, c_pad):
        return jnp.stack(
            [
                _pad_axis(b.astype(jnp.float32), c_pad, 1, 0.0),
                _pad_axis(g.astype(jnp.float32), c_pad, 1, 1.0),
                _pad_axis(be.astype(jnp.float32), c_pad, 1, 0.0),
                _pad_axis(a.astype(jnp.float32), c_pad, 1, 0.25),
            ],
            axis=1,
        )                                                        # (nb, 4, c_pad)

    p1 = pack_vecs(params["b1"], params["g1"], params["be1"], params["a1"], d2_pad)
    p2 = pack_vecs(params["b2"], params["g2"], params["be2"], params["a2"], d_pad)
    return w1t, p1, w2t, p2


def net_forward(x, params):
    """x: (N, D) float32.  params: dict of stacked per-block parameters."""
    n, d = x.shape
    n_blocks = params["w1"].shape[0]

    # Lane-dense padded feature widths (multiples of 128).
    d_pad = _round_up(d, 128)
    d2_pad = _round_up(2 * d, 128)

    x_p = _pad_axis(x.astype(jnp.float32), d_pad, 1)
    w1t, p1, w2t, p2 = _pack_params(params, d_pad, d2_pad)

    grid_spec = pltpu.PrefetchScalarGridSpec(
        num_scalar_prefetch=0,
        grid=(n_blocks,),
        in_specs=[
            pl.BlockSpec((n, d_pad), lambda i: (0, 0)),                        # x (read once)
            pl.BlockSpec((pl.Squeezed(), d_pad, d2_pad), lambda i: (i, 0, 0)),  # w1 (pre-T)
            pl.BlockSpec((pl.Squeezed(), 4, d2_pad), lambda i: (i, 0, 0)),      # packed vecs 1
            pl.BlockSpec((pl.Squeezed(), d2_pad, d_pad), lambda i: (i, 0, 0)),  # w2 (pre-T)
            pl.BlockSpec((pl.Squeezed(), 4, d_pad), lambda i: (i, 0, 0)),       # packed vecs 2
        ],
        out_specs=pl.BlockSpec((n, d_pad), lambda i: (0, 0)),   # resident carry
    )

    out = pl.pallas_call(
        net_kernel,
        out_shape=jax.ShapeDtypeStruct((n, d_pad), jnp.float32),
        grid_spec=grid_spec,
        compiler_params=pltpu.CompilerParams(
            dimension_semantics=("arbitrary",)),  # sequential carry over blocks
    )(x_p, w1t, p1, w2t, p2)

    return out[:, :d]


def init_params(key, input_dim, n_blocks):
    """Deterministic synthetic init (shapes match the PyTorch module)."""
    d, d2 = input_dim, 2 * input_dim
    ks = jax.random.split(key, 4 * n_blocks)
    w1 = jnp.stack([jax.random.normal(ks[4 * i + 0], (d2, d)) * 0.1
                    for i in range(n_blocks)])
    b1 = jnp.stack([jax.random.normal(ks[4 * i + 1], (d2,)) * 0.1
                    for i in range(n_blocks)])
    w2 = jnp.stack([jax.random.normal(ks[4 * i + 2], (d, d2)) * 0.1
                    for i in range(n_blocks)])
    b2 = jnp.stack([jax.random.normal(ks[4 * i + 3], (d,)) * 0.1
                    for i in range(n_blocks)])
    return dict(
        w1=w1.astype(jnp.float32), b1=b1.astype(jnp.float32),
        g1=jnp.ones((n_blocks, d2), jnp.float32),        # BN weight (default 1)
        be1=jnp.zeros((n_blocks, d2), jnp.float32),      # BN bias   (default 0)
        a1=jnp.full((n_blocks, d2), 0.25, jnp.float32),  # PReLU slope (default)
        w2=w2.astype(jnp.float32), b2=b2.astype(jnp.float32),
        g2=jnp.ones((n_blocks, d), jnp.float32),
        be2=jnp.zeros((n_blocks, d), jnp.float32),
        a2=jnp.full((n_blocks, d), 0.25, jnp.float32),
    )


def net_reference(x, params):
    """Pure-JAX reference of the same forward pass (for verification)."""
    def bn_prelu(h, g, b, a):
        m = jnp.mean(h, axis=0, keepdims=True)
        v = jnp.mean((h - m) ** 2, axis=0, keepdims=True)
        h = (h - m) / jnp.sqrt(v + EPS) * g + b
        return jnp.where(h >= 0, h, a * h)

    out = x
    for i in range(params["w1"].shape[0]):
        h = out @ params["w1"][i].T + params["b1"][i]
        h = bn_prelu(h, params["g1"][i], params["be1"][i], params["a1"][i])
        h = h @ params["w2"][i].T + params["b2"][i]
        h = bn_prelu(h, params["g2"][i], params["be2"][i], params["a2"][i])
        out = out + h
    return out


if __name__ == "__main__":
    N, D, N_BLOCKS = 8, 32, 3  # batch=8, input_dim=32, n_blocks=3

    key = jax.random.PRNGKey(0)
    kx, kp = jax.random.split(key)
    x = jax.random.normal(kx, (N, D), dtype=jnp.float32)
    params = init_params(kp, D, N_BLOCKS)

    out = net_forward(x, params)
    out = jax.block_until_ready(out)

    ref = net_reference(x, params)
    assert out.shape == (N, D) and out.dtype == jnp.float32
    assert jnp.allclose(out, ref, atol=1e-3, rtol=1e-3), "mismatch vs reference"

    print("KERNEL_OK")
</pallas_src>

<mosaic_0001>
module attributes {stable_mosaic.version = 11 : i64} {
  func.func @net_kernel(%arg0: i32, %arg1: memref<8x128xf32, #tpu.memory_space<vmem>>, %arg2: memref<1x128x128xf32, #tpu.memory_space<vmem>>, %arg3: memref<1x4x128xf32, #tpu.memory_space<vmem>>, %arg4: memref<1x128x128xf32, #tpu.memory_space<vmem>>, %arg5: memref<1x4x128xf32, #tpu.memory_space<vmem>>, %arg6: memref<8x128xf32, #tpu.memory_space<vmem>>) attributes {dimension_semantics = [#tpu.dimension_semantics<arbitrary>], iteration_bounds = array<i64: 3>, scalar_prefetch = 0 : i64, scratch_operands = 0 : i64, tpu.core_type = #tpu.core_type<tc>, window_params = [{pipeline_mode = #tpu.pipeline_mode<synchronous>, transform_indices = @transform_0, window_bounds = array<i64: 8, 128>}, {transform_indices = @transform_1, window_bounds = array<i64: 1, 128, 128>}, {transform_indices = @transform_2, window_bounds = array<i64: 1, 4, 128>}, {transform_indices = @transform_3, window_bounds = array<i64: 1, 128, 128>}, {transform_indices = @transform_4, window_bounds = array<i64: 1, 4, 128>}, {pipeline_mode = #tpu.pipeline_mode<synchronous>, transform_indices = @transform_5, window_bounds = array<i64: 8, 128>}]} {
    %c0_i32 = arith.constant 0 : i32
    %0 = arith.cmpi eq, %arg0, %c0_i32 : i32
    %1 = arith.extui %0 : i1 to i32
    %c0_i32_0 = arith.constant 0 : i32
    %2 = arith.cmpi ne, %1, %c0_i32_0 : i32
    scf.if %2 {
      %c0_29 = arith.constant 0 : index
      %c0_30 = arith.constant 0 : index
      %80 = vector.load %arg1[%c0_29, %c0_30] : memref<8x128xf32, #tpu.memory_space<vmem>>, vector<8x128xf32>
      %c0_31 = arith.constant 0 : index
      %c0_32 = arith.constant 0 : index
      %81 = vector.load %arg6[%c0_31, %c0_32] : memref<8x128xf32, #tpu.memory_space<vmem>>, vector<8x128xf32>
      tpu.vector_store %arg6[%c0_31, %c0_32], %80 {strides = array<i32>} : memref<8x128xf32, #tpu.memory_space<vmem>>, vector<8x128xf32>,
    } else {
    }
    %c0 = arith.constant 0 : index
    %c0_1 = arith.constant 0 : index
    %3 = vector.load %arg6[%c0, %c0_1] : memref<8x128xf32, #tpu.memory_space<vmem>>, vector<8x128xf32>
    %c0_2 = arith.constant 0 : index
    %c0_3 = arith.constant 0 : index
    %c0_4 = arith.constant 0 : index
    %4 = vector.load %arg2[%c0_2, %c0_3, %c0_4] : memref<1x128x128xf32, #tpu.memory_space<vmem>>, vector<1x128x128xf32>
    %5 = vector.shape_cast %4 : vector<1x128x128xf32> to vector<128x128xf32>
    %c0_5 = arith.constant 0 : index
    %c0_6 = arith.constant 0 : index
    %c0_7 = arith.constant 0 : index
    %6 = vector.load %arg3[%c0_5, %c0_6, %c0_7] : memref<1x4x128xf32, #tpu.memory_space<vmem>>, vector<1x4x128xf32>
    %7 = vector.shape_cast %6 : vector<1x4x128xf32> to vector<4x128xf32>
    %cst = arith.constant dense<0.000000e+00> : vector<8x128xf32>
    %8 = tpu.matmul %3, %5, %cst {dimension_numbers = #tpu.dot_dimension_numbers<[1], [0], [0], [1], [0, 0, 1, 1], [], []>} : vector<8x128xf32>, vector<128x128xf32>, vector<8x128xf32> -> vector<8x128xf32>
    %9 = vector.extract_strided_slice %7 {offsets = [0, 0], sizes = [1, 128], strides = [1, 1]} : vector<4x128xf32> to vector<1x128xf32>
    %10 = vector.broadcast %9 : vector<1x128xf32> to vector<8x128xf32>
    %11 = arith.addf %8, %10 : vector<8x128xf32>
    %12 = vector.extract_strided_slice %7 {offsets = [1, 0], sizes = [1, 128], strides = [1, 1]} : vector<4x128xf32> to vector<1x128xf32>
    %13 = vector.extract_strided_slice %7 {offsets = [2, 0], sizes = [1, 128], strides = [1, 1]} : vector<4x128xf32> to vector<1x128xf32>
    %14 = vector.extract_strided_slice %7 {offsets = [3, 0], sizes = [1, 128], strides = [1, 1]} : vector<4x128xf32> to vector<1x128xf32>
    %cst_8 = arith.constant dense<0.000000e+00> : vector<128xf32>
    %15 = vector.multi_reduction <add>, %11, %cst_8 [0] : vector<8x128xf32> to vector<128xf32>
    %16 = vector.shape_cast %15 : vector<128xf32> to vector<1x128xf32>
    %cst_9 = arith.constant 8.000000e+00 : f32
    %17 = vector.broadcast %cst_9 : f32 to vector<1x128xf32>
    %18 = arith.divf %16, %17 : vector<1x128xf32>
    %19 = arith.mulf %11, %11 : vector<8x128xf32>
    %cst_10 = arith.constant dense<0.000000e+00> : vector<128xf32>
    %20 = vector.multi_reduction <add>, %19, %cst_10 [0] : vector<8x128xf32> to vector<128xf32>
    %21 = vector.shape_cast %20 : vector<128xf32> to vector<1x128xf32>
    %cst_11 = arith.constant 8.000000e+00 : f32
    %22 = vector.broadcast %cst_11 : f32 to vector<1x128xf32>
    %23 = arith.divf %21, %22 : vector<1x128xf32>
    %24 = arith.mulf %18, %18 : vector<1x128xf32>
    %25 = arith.subf %23, %24 : vector<1x128xf32>
    %cst_12 = arith.constant 9.99999974E-6 : f32
    %26 = vector.broadcast %cst_12 : f32 to vector<1x128xf32>
    %27 = arith.addf %25, %26 : vector<1x128xf32>
    %28 = math.rsqrt %27 : vector<1x128xf32>
    %29 = arith.mulf %12, %28 : vector<1x128xf32>
    %30 = vector.broadcast %18 : vector<1x128xf32> to vector<8x128xf32>
    %31 = arith.subf %11, %30 : vector<8x128xf32>
    %32 = vector.broadcast %29 : vector<1x128xf32> to vector<8x128xf32>
    %33 = arith.mulf %31, %32 : vector<8x128xf32>
    %34 = vector.broadcast %13 : vector<1x128xf32> to vector<8x128xf32>
    %35 = arith.addf %33, %34 : vector<8x128xf32>
    %cst_13 = arith.constant 0.000000e+00 : f32
    %36 = vector.broadcast %cst_13 : f32 to vector<8x128xf32>
    %37 = arith.cmpf oge, %35, %36 : vector<8x128xf32>
    %38 = vector.broadcast %14 : vector<1x128xf32> to vector<8x128xf32>
    %39 = arith.mulf %38, %35 : vector<8x128xf32>
    %40 = arith.select %37, %35, %39 : vector<8x128xi1>, vector<8x128xf32>
    %c0_14 = arith.constant 0 : index
    %c0_15 = arith.constant 0 : index
    %c0_16 = arith.constant 0 : index
    %41 = vector.load %arg4[%c0_14, %c0_15, %c0_16] : memref<1x128x128xf32, #tpu.memory_space<vmem>>, vector<1x128x128xf32>
    %42 = vector.shape_cast %41 : vector<1x128x128xf32> to vector<128x128xf32>
    %c0_17 = arith.constant 0 : index
    %c0_18 = arith.constant 0 : index
    %c0_19 = arith.constant 0 : index
    %43 = vector.load %arg5[%c0_17, %c0_18, %c0_19] : memref<1x4x128xf32, #tpu.memory_space<vmem>>, vector<1x4x128xf32>
    %44 = vector.shape_cast %43 : vector<1x4x128xf32> to vector<4x128xf32>
    %cst_20 = arith.constant dense<0.000000e+00> : vector<8x128xf32>
    %45 = tpu.matmul %40, %42, %cst_20 {dimension_numbers = #tpu.dot_dimension_numbers<[1], [0], [0], [1], [0, 0, 1, 1], [], []>} : vector<8x128xf32>, vector<128x128xf32>, vector<8x128xf32> -> vector<8x128xf32>
    %46 = vector.extract_strided_slice %44 {offsets = [0, 0], sizes = [1, 128], strides = [1, 1]} : vector<4x128xf32> to vector<1x128xf32>
    %47 = vector.broadcast %46 : vector<1x128xf32> to vector<8x128xf32>
    %48 = arith.addf %45, %47 : vector<8x128xf32>
    %49 = vector.extract_strided_slice %44 {offsets = [1, 0], sizes = [1, 128], strides = [1, 1]} : vector<4x128xf32> to vector<1x128xf32>
    %50 = vector.extract_strided_slice %44 {offsets = [2, 0], sizes = [1, 128], strides = [1, 1]} : vector<4x128xf32> to vector<1x128xf32>
    %51 = vector.extract_strided_slice %44 {offsets = [3, 0], sizes = [1, 128], strides = [1, 1]} : vector<4x128xf32> to vector<1x128xf32>
    %cst_21 = arith.constant dense<0.000000e+00> : vector<128xf32>
    %52 = vector.multi_reduction <add>, %48, %cst_21 [0] : vector<8x128xf32> to vector<128xf32>
    %53 = vector.shape_cast %52 : vector<128xf32> to vector<1x128xf32>
    %cst_22 = arith.constant 8.000000e+00 : f32
    %54 = vector.broadcast %cst_22 : f32 to vector<1x128xf32>
    %55 = arith.divf %53, %54 : vector<1x128xf32>
    %56 = arith.mulf %48, %48 : vector<8x128xf32>
    %cst_23 = arith.constant dense<0.000000e+00> : vector<128xf32>
    %57 = vector.multi_reduction <add>, %56, %cst_23 [0] : vector<8x128xf32> to vector<128xf32>
    %58 = vector.shape_cast %57 : vector<128xf32> to vector<1x128xf32>
    %cst_24 = arith.constant 8.000000e+00 : f32
    %59 = vector.broadcast %cst_24 : f32 to vector<1x128xf32>
    %60 = arith.divf %58, %59 : vector<1x128xf32>
    %61 = arith.mulf %55, %55 : vector<1x128xf32>
    %62 = arith.subf %60, %61 : vector<1x128xf32>
    %cst_25 = arith.constant 9.99999974E-6 : f32
    %63 = vector.broadcast %cst_25 : f32 to vector<1x128xf32>
    %64 = arith.addf %62, %63 : vector<1x128xf32>
    %65 = math.rsqrt %64 : vector<1x128xf32>
    %66 = arith.mulf %49, %65 : vector<1x128xf32>
    %67 = vector.broadcast %55 : vector<1x128xf32> to vector<8x128xf32>
    %68 = arith.subf %48, %67 : vector<8x128xf32>
    %69 = vector.broadcast %66 : vector<1x128xf32> to vector<8x128xf32>
    %70 = arith.mulf %68, %69 : vector<8x128xf32>
    %71 = vector.broadcast %50 : vector<1x128xf32> to vector<8x128xf32>
    %72 = arith.addf %70, %71 : vector<8x128xf32>
    %cst_26 = arith.constant 0.000000e+00 : f32
    %73 = vector.broadcast %cst_26 : f32 to vector<8x128xf32>
    %74 = arith.cmpf oge, %72, %73 : vector<8x128xf32>
    %75 = vector.broadcast %51 : vector<1x128xf32> to vector<8x128xf32>
    %76 = arith.mulf %75, %72 : vector<8x128xf32>
    %77 = arith.select %74, %72, %76 : vector<8x128xi1>, vector<8x128xf32>
    %78 = arith.addf %3, %77 : vector<8x128xf32>
    %c0_27 = arith.constant 0 : index
    %c0_28 = arith.constant 0 : index
    %79 = vector.load %arg6[%c0_27, %c0_28] : memref<8x128xf32, #tpu.memory_space<vmem>>, vector<8x128xf32>
    tpu.vector_store %arg6[%c0_27, %c0_28], %78 {strides = array<i32>} : memref<8x128xf32, #tpu.memory_space<vmem>>, vector<8x128xf32>,
    return
  }
  func.func @transform_0(%arg0: i32) -> (i32, i32) {
    %c0_i32 = arith.constant 0 : i32
    %c0_i32_0 = arith.constant 0 : i32
    %c0_i32_1 = arith.constant 0 : i32
    return %c0_i32, %c0_i32_0 : i32, i32
  }
  func.func @transform_1(%arg0: i32) -> (i32, i32, i32) {
    %c0_i32 = arith.constant 0 : i32
    %c0_i32_0 = arith.constant 0 : i32
    %c0_i32_1 = arith.constant 0 : i32
    return %arg0, %c0_i32, %c0_i32_0 : i32, i32, i32
  }
  func.func @transform_2(%arg0: i32) -> (i32, i32, i32) {
    %c0_i32 = arith.constant 0 : i32
    %c0_i32_0 = arith.constant 0 : i32
    %c0_i32_1 = arith.constant 0 : i32
    return %arg0, %c0_i32, %c0_i32_0 : i32, i32, i32
  }
  func.func @transform_3(%arg0: i32) -> (i32, i32, i32) {
    %c0_i32 = arith.constant 0 : i32
    %c0_i32_0 = arith.constant 0 : i32
    %c0_i32_1 = arith.constant 0 : i32
    return %arg0, %c0_i32, %c0_i32_0 : i32, i32, i32
  }
  func.func @transform_4(%arg0: i32) -> (i32, i32, i32) {
    %c0_i32 = arith.constant 0 : i32
    %c0_i32_0 = arith.constant 0 : i32
    %c0_i32_1 = arith.constant 0 : i32
    return %arg0, %c0_i32, %c0_i32_0 : i32, i32, i32
  }
  func.func @transform_5(%arg0: i32) -> (i32, i32) {
    %c0_i32 = arith.constant 0 : i32
    %c0_i32_0 = arith.constant 0 : i32
    %c0_i32_1 = arith.constant 0 : i32
    return %c0_i32, %c0_i32_0 : i32, i32
  }
}

</mosaic_0001>

<bundles_post_ra>
// kernel: tpu_custom_call.1
= control target key start
LH: loop header
LB: loop body
LE: loop exit
PB: predicated region body
PF: predicated region fallthrough
CT: control target
= control target key end

     0   :  { %s1538_s0 = inlined_call_operand.hbm [shape: f32[8,128], index: 0, kind: input, shape index: {}]   ;;  %s1539_s1 = inlined_call_operand.hbm [shape: f32[3,128,128], index: 1, kind: input, shape index: {}]   ;;  %s1540_s2 = inlined_call_operand.hbm [shape: f32[3,4,128], index: 2, kind: input, shape index: {}]   ;;  %s1541_s3 = inlined_call_operand.hbm [shape: f32[3,128,128], index: 3, kind: input, shape index: {}]   ;;  %s1542_s4 = inlined_call_operand.vmem [shape: f32[3,4,128], index: 4, kind: input, shape index: {}]   ;;  %s1543_s5 = inlined_call_operand.hbm [shape: f32[8,128], index: 5, kind: output, shape index: {}]  }
   0x1   :  { %1555 = sst [smem:[#allocation15_spill]] %s1539_s1 }
   0x2   :  { %10 = vsyncpa [#allocation3], 0 }
   0x3   :  { %11 = vsyncpa [#allocation6], 0 }
   0x4   :  { %13 = vsyncpa [#allocation6 + $0x1], 0 }
   0x5   :  { %14 = vsyncpa [#allocation9], 0 }
   0x6   :  { %16 = vsyncpa [#allocation9 + $0x1], 0 }
   0x7   :  { %17 = vsyncpa [#allocation4], 0  ;;  %s1212_s18 = smov 0   ;;  %s1214_s19 = smov 0  }
   0x8   :  { %s1216_s20 = smov 0   ;;  %s1218_s21 = smov 0  }
   0x9 LB: > { %s1233_s22 = sadd.s32 1, %s1170_s21   ;;  %s51_s23 = sadd.s32 1, %s1166_s20  ;;  %s1170_s21 = sphi %s1218_s21, %s1576_s21   ;;  %s1166_s20 = sphi %s1216_s20, %s1575_s20   ;;  %s1162_s19 = sphi %s1214_s19, %s1574_s19   ;;  %s1158_s18 = sphi %s1212_s18, %s1573_s18  }
   0xa   : > { %s48_s24 = ssub.s32 %s1170_s21, %s1233_s22  ;;  %p58_p0 = scmp.ne.s32.totalorder %s1166_s20, %s1162_s19 }
   0xb   : > { %p49_p1 = scmp.eq.s32.totalorder %s48_s24, 0  ;;  %p59_p2 = scmp.eq.s32.totalorder %s1170_s21, 0 }
   0xc   : > { %p933_p3 = scmp.lt.s32.totalorder %s1170_s21, 3  ;;  %s198_s26 = sand.u32 1, %s1170_s21  }
   0xd   : > { %s1243_s25 = scalar_select %p49_p1, %s1166_s20, %s51_s23  }
   0xe   : > { %p60_p4 = por %p59_p2, %p58_p0  ;;  %s1247_s27 = sand.u32 1, %s1166_s20  }
   0xf   : > { %s1546_s28 = sshll.u32 %s1247_s27, 7  ;;  %s1547_s29 = sshll.u32 %s1170_s21, 11 }
  0x10   : > { %s1556_s1 = sld [smem:[#allocation15_spill]]  ;;  %s202_s8 = scalar_lea.vmem [#allocation5], %s1546_s28 }
  0x11   : > { %s209_s9 = sshll.u32 %s202_s8, 4  ;;  %p1260_p5 = pnand %p933_p3, %p60_p4  ;;  %s1264_s9 = int_to_ptr.vmem [resolvable:$true] %s209_s9 }
  0x12   : > { %s1266_s11 = scalar_lea.sflag [#allocation6], %s198_s26 }
  0x13   : > { %s1557_s10 = scalar_select %p1260_p5, 1, 0 }
  0x14   : > { %p1272_p7 = pneg %p1260_p5 }
  0x16   : > { %s1256_s7 = scalar_lea.hbm %s1556_s1, %s1547_s29  ;;  %s985_s16 = scalar_lea.hbm %s1556_s1, 6144 }
  0x17   : > { %s980_s12 = scalar_lea.hbm %s1256_s7, 2048  ;;  %p986_p10 = scmp.lt.u32.totalorder %s1256_s7, %s1556_s1 }
  0x18   : > { %p981_p6 = scmp.ne.s32.totalorder %s1256_s7, %s980_s12  ;;  %p987_p11 = scmp.lt.u32.totalorder %s985_s16, %s980_s12 }
  0x19   : > { %s1558_s13 = scalar_select %p1272_p7, 1, 0 }
  0x1a   : > { %p983_p8 = pnand %p1272_p7, %p981_p6  ;;  %p988_p12 = por %p987_p11, %p986_p10 }
  0x1b   : > { %p989_p13 = scmp.lt.u32.totalorder %s980_s12, %s1256_s7 }
  0x1c   : > { %p984_p9 = pneg %p983_p8 }
  0x1d   : > { %p990_p0 = por %p989_p13, %p988_p12 }
  0x1f   : > { %p991_p1 = pnand %p990_p0, %p984_p9 }
  0x21   : > { %994 = shalt.err (!%p991_p1)
}
  0x22   : > { %s995_s24 = scalar_lea.vmem %s1264_s9, 2048  ;;  %s1172_s26 = smov [#allocation5]  }
  0x23   : > { %p996_p2 = scmp.ne.s32.totalorder %s1264_s9, %s995_s24  ;;  %s1000_s30 = sshll.u32 %s1172_s26, 4  ;;  %s1001_s30 = int_to_ptr.vmem [resolvable:$false] %s1000_s30 }
  0x24   : > { %s1002_s6 = scalar_lea.vmem %s1001_s30, 4096  ;;  %p1003_p6 = scmp.lt.s32.totalorder %s1264_s9, %s1001_s30 }
  0x25   : > { %p998_p3 = pnand %p996_p2, %p1272_p7  ;;  %p1004_p8 = scmp.lt.s32.totalorder %s1002_s6, %s995_s24 }
  0x27   : > { %p999_p4 = pneg %p998_p3  ;;  %p1005_p10 = por %p1004_p8, %p1003_p6 }
  0x29   : > { %p1006_p11 = pnand %p1005_p10, %p999_p4 }
  0x2b   : > { %1009 = shalt.err (!%p1006_p11)
}
  0x2c   : > { %s1544_s8 = smov 128   ;;  %s1545_s12 = smov 8  }
  0x2d   : > { %925 = dma.hbm_to_vmem [thread:$0]  (!%p1260_p5), %s1256_s7, 2048, %s1264_s9, %s1266_s11, %s1544_s8, %s1544_s8, %s1545_s12  }
  0x2e   : > { %s1300_s14 = sadd.s32 4294967295, %s1170_s21   ;;  %p64_p12 = scmp.ne.s32.totalorder %s1162_s19, %s1158_s18 }
  0x2f   : > { %p1548_p9 = scmp.eq.s32.totalorder %s1300_s14, 0  ;;  %p728_p13 = scmp.ge.s32.totalorder %s1170_s21, 1 }
  0x30   : > { %p174_p0 = scmp.lt.s32.totalorder %s1170_s21, 4  ;;  %s1175_s7 = smov [#allocation2]  }
  0x31   : > { %p1310_p2 = por %p1548_p9, %p64_p12  ;;  %s187_s9 = sshll.u32 %s1175_s7, 4  ;;  %s188_s9 = int_to_ptr.vmem [resolvable:$true] %s187_s9 }
  0x32   : > { %p1314_p3 = pnand %p728_p13, %p174_p0  ;;  %s734_s17 = sshll.u32 %s1247_s27, 2 }
  0x33   : > { %s1559_s15 = scalar_select %p1310_p2, 1, 0 }
  0x34   : > { %s1560_s16 = scalar_select %p1314_p3, 1, 0 }
  0x35   : > { %p918_p4 = pneg %p1314_p3  ;;  %s735_s18 = sshll.u32 %s1170_s21, 6 }
  0x36   : > { %s223_s23 = scalar_lea.vmem [#allocation7], %s734_s17  ;;  %s1331_s8 = scalar_lea.hbm %s1540_s2, %s735_s18 }
  0x37   : > { %s230_s24 = sshll.u32 %s223_s23, 4  ;;  %p1324_p6 = pnand %p918_p4, %p1548_p9  ;;  %s1333_s24 = int_to_ptr.vmem [resolvable:$true] %s230_s24 }
  0x38   : > { %s1010_s28 = scalar_lea.hbm %s1538_s0, 128 }
  0x39   : > { %p1011_p8 = scmp.ne.s32.totalorder %s1538_s0, %s1010_s28  ;;  %p1012_p10 = pneg %p1324_p6 }
  0x3a   : > { %p1017_p13 = scmp.lt.u32.totalorder %s1010_s28, %s1538_s0 }
  0x3b   : > { %p1013_p11 = pnand %p1012_p10, %p1011_p8 }
  0x3d   : > { %p1014_p12 = pneg %p1013_p11 }
  0x3f   : > { %p1019_p0 = pnand %p1017_p13, %p1014_p12 }
  0x41   : > { %1022 = shalt.err (!%p1019_p0)
}
  0x42   : > { %s1023_s18 = scalar_lea.vmem %s188_s9, 128  ;;  %p1031_p2 = scmp.lt.s32.totalorder %s188_s9, %s188_s9 }
  0x43   : > { %p1024_p4 = scmp.ne.s32.totalorder %s188_s9, %s1023_s18  ;;  %p1032_p3 = scmp.lt.s32.totalorder %s1023_s18, %s1023_s18 }
  0x45   : > { %p1026_p1 = pnand %p1024_p4, %p1012_p10  ;;  %p1033_p5 = por %p1032_p3, %p1031_p2 }
  0x47   : > { %p1027_p9 = pneg %p1026_p1 }
  0x49   : > { %p1034_p7 = pnand %p1033_p5, %p1027_p9 }
  0x4b   : > { %1037 = shalt.err (!%p1034_p7)
}
  0x4c   : > { %921 = dma.hbm_to_vmem [thread:$0]  (!%p1324_p6), %s1538_s0, 128, %s188_s9, [#allocation3]  }
  0x4d   : > { %s1038_s1 = scalar_lea.hbm %s1331_s8, 64  ;;  %p1562_p10 = scmp.ne.s32.totalorder %s1558_s13, 0 }
  0x4e   : > { %p1039_p8 = scmp.ne.s32.totalorder %s1331_s8, %s1038_s1  ;;  %s1043_s6 = scalar_lea.hbm %s1540_s2, 192 }
  0x4f   : > { %p1044_p5 = scmp.lt.u32.totalorder %s1331_s8, %s1540_s2  ;;  %p1045_p7 = scmp.lt.u32.totalorder %s1043_s6, %s1038_s1 }
  0x50   : > { %p1041_p1 = pnand %p1039_p8, %p1562_p10  ;;  %p1047_p2 = scmp.lt.u32.totalorder %s1038_s1, %s1331_s8 }
  0x51   : > { %p1046_p9 = por %p1045_p7, %p1044_p5 }
  0x52   : > { %p1042_p11 = pneg %p1041_p1 }
  0x53   : > { %p1048_p3 = por %p1047_p2, %p1046_p9 }
  0x55   : > { %p1049_p12 = pnand %p1048_p3, %p1042_p11 }
  0x57   : > { %1052 = shalt.err (!%p1049_p12)
}
  0x58   : > { %s1053_s9 = scalar_lea.vmem %s1333_s24, 64  ;;  %s1176_s17 = smov [#allocation7]  }
  0x59   : > { %p1054_p6 = scmp.ne.s32.totalorder %s1333_s24, %s1053_s9  ;;  %s1058_s23 = sshll.u32 %s1176_s17, 4  ;;  %s1059_s23 = int_to_ptr.vmem [resolvable:$false] %s1058_s23 }
  0x5a   : > { %s1060_s18 = scalar_lea.vmem %s1059_s23, 128  ;;  %p1061_p4 = scmp.lt.s32.totalorder %s1333_s24, %s1059_s23 }
  0x5b   : > { %p1056_p13 = pnand %p1054_p6, %p1562_p10  ;;  %p1062_p8 = scmp.lt.s32.totalorder %s1060_s18, %s1053_s9 }
  0x5d   : > { %p1057_p0 = pneg %p1056_p13  ;;  %p1063_p1 = por %p1062_p8, %p1061_p4 }
  0x5f   : > { %p1064_p5 = pnand %p1063_p1, %p1057_p0 }
  0x61   : > { %1067 = shalt.err (!%p1064_p5)
}
  0x62   : > { %p1563_p11 = scmp.ne.s32.totalorder %s1557_s10, 0  ;;  %s1564_s29 = sshll.u32 %s1170_s21, 11 }
  0x63   : > { %s1378_s28 = scalar_lea.hbm %s1541_s3, %s1564_s29  ;;  %s1565_s30 = sshll.u32 %s1247_s27, 7 }
  0x64   : > { %928 = dma.hbm_to_vmem [thread:$0]  (!%p1563_p11), %s1331_s8, 64, %s1333_s24, %s1266_s11  }
  0x65   : > { %s241_s6 = scalar_lea.vmem [#allocation8], %s1565_s30  ;;  %s238_s26 = scalar_lea.sflag [#allocation9], %s1247_s27 }
  0x66   : > { %s248_s7 = sshll.u32 %s241_s6, 4  ;;  %s1068_s9 = scalar_lea.hbm %s1378_s28, 2048  ;;  %s1382_s7 = int_to_ptr.vmem [resolvable:$true] %s248_s7 }
  0x67   : > { %p1069_p7 = scmp.ne.s32.totalorder %s1378_s28, %s1068_s9  ;;  %s1073_s8 = scalar_lea.hbm %s1541_s3, 6144 }
  0x68   : > { %p1074_p3 = scmp.lt.u32.totalorder %s1378_s28, %s1541_s3  ;;  %p1075_p12 = scmp.lt.u32.totalorder %s1073_s8, %s1068_s9 }
  0x69   : > { %p1071_p9 = pnand %p1069_p7, %p1562_p10  ;;  %p1077_p13 = scmp.lt.u32.totalorder %s1068_s9, %s1378_s28 }
  0x6a   : > { %p1076_p6 = por %p1075_p12, %p1074_p3 }
  0x6b   : > { %p1072_p2 = pneg %p1071_p9 }
  0x6c   : > { %p1078_p0 = por %p1077_p13, %p1076_p6 }
  0x6e   : > { %p1079_p4 = pnand %p1078_p0, %p1072_p2 }
  0x70   : > { %1082 = shalt.err (!%p1079_p4)
}
  0x71   : > { %s1083_s23 = scalar_lea.vmem %s1382_s7, 2048  ;;  %s1177_s18 = smov [#allocation8]  }
  0x72   : > { %p1084_p8 = scmp.ne.s32.totalorder %s1382_s7, %s1083_s23  ;;  %s1088_s29 = sshll.u32 %s1177_s18, 4  ;;  %s1089_s29 = int_to_ptr.vmem [resolvable:$false] %s1088_s29 }
  0x73   : > { %s1090_s12 = scalar_lea.vmem %s1089_s29, 4096  ;;  %p1091_p7 = scmp.lt.s32.totalorder %s1382_s7, %s1089_s29 }
  0x74   : > { %p1086_p1 = pnand %p1084_p8, %p1562_p10  ;;  %p1092_p9 = scmp.lt.s32.totalorder %s1090_s12, %s1083_s23 }
  0x76   : > { %p1087_p5 = pneg %p1086_p1  ;;  %p1093_p3 = por %p1092_p9, %p1091_p7 }
  0x78   : > { %p1094_p12 = pnand %p1093_p3, %p1087_p5 }
  0x7a   : > { %1097 = shalt.err (!%p1094_p12)
}
  0x7b   : > { %s1566_s1 = smov 8   ;;  %s1567_s30 = smov 128  }
  0x7c   : > { %931 = dma.hbm_to_vmem [thread:$0]  (!%p1563_p11), %s1378_s28, 2048, %s1382_s7, %s238_s26, %s1567_s30, %s1567_s30, %s1566_s1  }
  0x7d   : > { %p1568_p10 = scmp.ne.s32.totalorder %s1560_s16, 0 }
  0x7e   : > { %p1569_p2 = scmp.eq.s32.totalorder (!%p1568_p10), %s1300_s14, 0 }
  0x7f   : > { %267 = sbr.rel (%p1568_p10) target bundleno = 716 (0x2cc), region = 40 }
  0x86   : > { %1141 = dma.done.wait (%p1569_p2), [#allocation3], 128   ;;  %p1570_p6 = pmov %p1569_p2 }
  0x87   : > { %s273_s10 = sand.u32 1, %s1300_s14   ;;  %s275_s13 = sand.u32 1, %s1162_s19  }
  0x88   : > { %1143 = vsyncadd (%p1570_p6), [#allocation3], 4294967168  ;;  %s741_s6 = sshll.u32 %s275_s13, 7  ;;  %s274_s9 = scalar_lea.sflag [#allocation6], %s273_s10 }
  0x89   : > { %s1419_s27 = scalar_lea.vmem [#allocation5], %s741_s6  ;;  %p1571_p13 = scmp.ne.s32.totalorder %s1559_s15, 0 }
  0x8b   : > { %1145 = dma.done.wait (%p1571_p13), %s274_s9, 2112  }
  0x8c   : > { %1147 = vsyncadd (%p1571_p13), %s274_s9, 4294965184  ;;  %s742_s16 = sshll.u32 %s275_s13, 2  ;;  %s292_s7 = scalar_lea.sflag [#allocation9], %s275_s13 }
  0x8d   : > { %s1425_s28 = scalar_lea.vmem [#allocation7], %s742_s16  ;;  %s1427_s26 = scalar_lea.vmem [#allocation8], %s741_s6 }
  0x8e   : > { %1149 = dma.done.wait (%p1571_p13), %s292_s7, 2048  }
  0x8f   : > { %1151 = vsyncadd (%p1571_p13), %s292_s7, 4294965248  ;;  %p331_p11 = scmp.lt.s32.totalorder %s1300_s14, 2  ;;  %p1572_p0 = scmp.ne.s32.totalorder %s1300_s14, 0 }
  0x90   : > { %v339_v0 = vld [vmem:[#allocation2] sm:$0xff] (!%p1572_p0) }
  0x91   : > { %s332_s21 = scalar_select %p331_p11, %s1300_s14, 2 }
  0x92   : > { %338 = sbr.rel (%p1572_p0) target bundleno = 153 (0x99), region = 60  ;;  %340 = vst [vmem:[#allocation10] sm:$0xff] (!%p1572_p0), %v339_v0 }
  0x93   : > { %s744_s11 = sshll.u32 %s332_s21, 2 }
  0x94   : > { %s1438_s17 = scalar_lea.vmem %s1542_s4, %s744_s11 }
  0x99 PF: > { %v342_v1 = vld [vmem:[%s1419_s27] sm:$0xff]  ;;  %v343_v2 = vld [vmem:[%s1419_s27 + $0x8] sm:$0xff]  ;;  %v344_v3 = vld [vmem:[%s1419_s27 + $0x10] sm:$0xff]  ;;  %v1178_v4 = vmov 0.0|0.0   ;;  %vm1179_vm0 = vmmov 0   ;;  %v1180_v7 = vmov 0.0   ;;  %v359_v52 = vlaneseq }
  0x9a   : > { %856 = vmatprep.subr.bf16.mxu0 %v1178_v4  ;;  %v857_v5 = vpack.c.bf16 %v343_v2, %v342_v1  ;;  %v345_v6 = vld [vmem:[%s1419_s27 + $0x18] sm:$0xff]  ;;  %818 = vmatprep.mubr.msk.f32.mxu0 %vm1179_vm0, %v1180_v7  ;;  %v346_v9 = vld [vmem:[%s1419_s27 + $0x20] sm:$0xff]  ;;  %v347_v10 = vld [vmem:[%s1419_s27 + $0x28] sm:$0xff]  ;;  %s1181_s15 = smov [#allocation10]   ;;  %p935_p4 = scmp.eq.s32.totalorder %s1300_s14, 2 }
  0x9b   : > { %880 = vmatprep.subr.bf16.mxu1 %v1178_v4  ;;  %853 = vmatprep.mubr.msk.f32.mxu1 %vm1179_vm0, %v1180_v7  ;;  %v860_v8 = vpack.c.bf16 %v345_v6, %v344_v3  ;;  %v863_v11 = vpack.c.bf16 %v347_v10, %v346_v9  ;;  %v348_v12 = vld [vmem:[%s1419_s27 + $0x30] sm:$0xff]  ;;  %v349_v13 = vld [vmem:[%s1419_s27 + $0x38] sm:$0xff]  ;;  %v350_v15 = vld [vmem:[%s1419_s27 + $0x40] sm:$0xff]  ;;  %v1493_v53 = vshrl.u32 %v359_v52, 7  ;;  %s610_s23 = sshll.u32 %s1181_s15, 4  ;;  %s611_s23 = int_to_ptr.vmem [resolvable:$true] %s610_s23 }
  0x9c   : > { %858 = vmatpush3.bf16.msra.mxu0 %v857_v5  ;;  %v866_v14 = vpack.c.bf16 %v349_v13, %v348_v12  ;;  %v351_v16 = vld [vmem:[%s1419_s27 + $0x48] sm:$0xff]  ;;  %v352_v18 = vld [vmem:[%s1419_s27 + $0x50] sm:$0xff]  ;;  %v353_v19 = vld [vmem:[%s1419_s27 + $0x58] sm:$0xff]  ;;  %s1098_s18 = scalar_lea.vmem %s611_s23, 128  ;;  %p1105_p7 = scmp.lt.s32.totalorder %s611_s23, %s611_s23 }
  0x9d   : > { %859 = vmatprep.subr.bf16.mxu0 %v1178_v4  ;;  %v869_v17 = vpack.c.bf16 %v351_v16, %v350_v15  ;;  %v872_v20 = vpack.c.bf16 %v353_v19, %v352_v18  ;;  %v354_v21 = vld [vmem:[%s1419_s27 + $0x60] sm:$0xff]  ;;  %v355_v22 = vld [vmem:[%s1419_s27 + $0x68] sm:$0xff]  ;;  %v356_v24 = vld [vmem:[%s1419_s27 + $0x70] sm:$0xff]  ;;  %v361_v54 = vsub.s32 0, %v1493_v53  ;;  %v462_v15 = vsub.s32 2, %v1493_v53  ;;  %p1099_p8 = scmp.ne.s32.totalorder %s611_s23, %s1098_s18  ;;  %p1106_p9 = scmp.lt.s32.totalorder %s1098_s18, %s1098_s18 }
  0x9e   : > { %v875_v23 = vpack.c.bf16 %v355_v22, %v354_v21  ;;  %v357_v25 = vld [vmem:[%s1419_s27 + $0x78] sm:$0xff]  ;;  %v1467_v27 = vld [vmem:[#allocation10] sm:$0xff]  ;;  %v473_v29 = vld [vmem:[%s1427_s26 + $0x8] sm:$0xff]  ;;  %v468_v18 = vsub.s32 3, %v1493_v53 }
  0x9f   : > { %v878_v26 = vpack.c.bf16 %v357_v25, %v356_v24  ;;  %v472_v28 = vld [vmem:[%s1427_s26] sm:$0xff]  ;;  %v474_v31 = vld [vmem:[%s1427_s26 + $0x10] sm:$0xff]  ;;  %v475_v32 = vld [vmem:[%s1427_s26 + $0x18] sm:$0xff]  ;;  %p1100_p1 = pnand %p1099_p8, %p935_p4  ;;  %p1107_p3 = por %p1106_p9, %p1105_p7 }
  0xa0   : > { %861 = vmatpush3.bf16.msra.mxu0 %v860_v8  ;;  %v881_v30 = vpack.c.bf16 %v473_v29, %v472_v28  ;;  %v884_v33 = vpack.c.bf16 %v475_v32, %v474_v31  ;;  %v476_v34 = vld [vmem:[%s1427_s26 + $0x20] sm:$0xff]  ;;  %v477_v35 = vld [vmem:[%s1427_s26 + $0x28] sm:$0xff]  ;;  %v478_v37 = vld [vmem:[%s1427_s26 + $0x30] sm:$0xff] }
  0xa1   : > { %862 = vmatprep.subr.bf16.mxu0 %v1178_v4  ;;  %v887_v36 = vpack.c.bf16 %v477_v35, %v476_v34  ;;  %v479_v38 = vld [vmem:[%s1427_s26 + $0x38] sm:$0xff]  ;;  %v480_v40 = vld [vmem:[%s1427_s26 + $0x40] sm:$0xff]  ;;  %v481_v41 = vld [vmem:[%s1427_s26 + $0x48] sm:$0xff]  ;;  %p1101_p5 = pneg %p1100_p1 }
  0xa2   : > { %882 = vmatpush3.bf16.msra.mxu1 %v881_v30  ;;  %v890_v39 = vpack.c.bf16 %v479_v38, %v478_v37  ;;  %v893_v42 = vpack.c.bf16 %v481_v41, %v480_v40  ;;  %v482_v43 = vld [vmem:[%s1427_s26 + $0x50] sm:$0xff]  ;;  %v483_v44 = vld [vmem:[%s1427_s26 + $0x58] sm:$0xff]  ;;  %v484_v46 = vld [vmem:[%s1427_s26 + $0x60] sm:$0xff] }
  0xa3   : > { %883 = vmatprep.subr.bf16.mxu1 %v1178_v4  ;;  %v896_v45 = vpack.c.bf16 %v483_v44, %v482_v43  ;;  %v485_v47 = vld [vmem:[%s1427_s26 + $0x68] sm:$0xff]  ;;  %v486_v49 = vld [vmem:[%s1427_s26 + $0x70] sm:$0xff]  ;;  %v487_v50 = vld [vmem:[%s1427_s26 + $0x78] sm:$0xff]  ;;  %p1108_p12 = pnand %p1107_p3, %p1101_p5 }
  0xa4   : > { %864 = vmatpush3.bf16.msra.mxu0 %v863_v11  ;;  %v899_v48 = vpack.c.bf16 %v485_v47, %v484_v46  ;;  %v902_v51 = vpack.c.bf16 %v487_v50, %v486_v49  ;;  %v358_v55 = vld [vmem:[%s1425_s28] sm:$0xf]  ;;  %v488_v28 = vld [vmem:[%s1438_s17] sm:$0xf] }
  0xa5   : > { %865 = vmatprep.subr.bf16.mxu0 %v1178_v4  ;;  %v362_v56 = vrot.slane %v358_v55, %v361_v54  ;;  %v463_v21 = vrot.slane %v358_v55, %v462_v15  ;;  %v492_v29 = vrot.slane %v488_v28, %v361_v54 }
  0xa6   : > { %885 = vmatpush3.bf16.msra.mxu1 %v884_v33 }
  0xa7   : > { %886 = vmatprep.subr.bf16.mxu1 %v1178_v4 }
  0xa8   : > { %867 = vmatpush3.bf16.msra.mxu0 %v866_v14  ;;  %v457_v14 = vsub.s32 1, %v1493_v53 }
  0xa9   : > { %868 = vmatprep.subr.bf16.mxu0 %v1178_v4 }
  0xaa   : > { %888 = vmatpush3.bf16.msra.mxu1 %v887_v36 }
  0xab   : > { %889 = vmatprep.subr.bf16.mxu1 %v1178_v4 }
  0xac   : > { %870 = vmatpush3.bf16.msra.mxu0 %v869_v17 }
  0xad   : > { %871 = vmatprep.subr.bf16.mxu0 %v1178_v4 }
  0xae   : > { %891 = vmatpush3.bf16.msra.mxu1 %v890_v39 }
  0xaf   : > { %892 = vmatprep.subr.bf16.mxu1 %v1178_v4 }
  0xb0   : > { %873 = vmatpush3.bf16.msra.mxu0 %v872_v20 }
  0xb1   : > { %874 = vmatprep.subr.bf16.mxu0 %v1178_v4 }
  0xb2   : > { %894 = vmatpush3.bf16.msra.mxu1 %v893_v42 }
  0xb3   : > { %895 = vmatprep.subr.bf16.mxu1 %v1178_v4 }
  0xb4   : > { %876 = vmatpush3.bf16.msra.mxu0 %v875_v23  ;;  %v469_v23 = vrot.slane %v358_v55, %v468_v18 }
  0xb5   : > { %877 = vmatprep.subr.bf16.mxu0 %v1178_v4 }
  0xb6   : > { %897 = vmatpush3.bf16.msra.mxu1 %v896_v45 }
  0xb7   : > { %898 = vmatprep.subr.bf16.mxu1 %v1178_v4 }
  0xb8   : > { %879 = vmatpush3.bf16.msra.mxu0 %v878_v26 }
  0xba   : > { %900 = vmatpush3.bf16.msra.mxu1 %v899_v48 }
  0xbb   : > { %819 = vmatmul.mubr.f32.vlgmr.msra.gmra.mrb[0].mxu0 %v1467_v27  ;;  %901 = vmatprep.subr.bf16.mxu1 %v1178_v4 }
  0xbe   : > { %903 = vmatpush3.bf16.msra.mxu1 %v902_v51 }
 0x18e   : > { %v429_v57 = vpop.f32.mrb[0].mxu0 }
 0x18f   : > { %v430_v58 = vadd.f32 %v429_v57, %v362_v56  ;;  %v820_v59 = vpop.f32.mrb[1].mxu0  ;;  %v598_v57 = vrot.slane %v488_v28, %v468_v18 }
 0x191   : > { %v433_v60 = vrot.slane %v430_v58, 4  ;;  %v441_v61 = vmul.f32 %v430_v58, %v430_v58 }
 0x193   : > { %v434_v62 = vadd.f32 %v433_v60, %v430_v58  ;;  %v442_v63 = vrot.slane %v441_v61, 4 }
 0x195   : > { %v435_v0 = vrot.slane %v434_v62, 2  ;;  %v443_v1 = vadd.f32 %v442_v63, %v441_v61 }
 0x197   : > { %v436_v2 = vadd.f32 %v435_v0, %v434_v62  ;;  %v444_v3 = vrot.slane %v443_v1, 2 }
 0x199   : > { %v437_v4 = vrot.slane %v436_v2, 1  ;;  %v445_v5 = vadd.f32 %v444_v3, %v443_v1 }
 0x19b   : > { %v438_v6 = vadd.f32 %v437_v4, %v436_v2  ;;  %v446_v7 = vrot.slane %v445_v5, 1 }
 0x19d   : > { %v440_v8 = vmul.f32 0.125, %v438_v6  ;;  %v447_v9 = vadd.f32 %v446_v7, %v445_v5 }
 0x19f   : > { %v448_v10 = vmul.f32 0.125, %v447_v9  ;;  %v449_v11 = vmul.f32 %v440_v8, %v440_v8  ;;  %v454_v19 = vsub.f32 %v430_v58, %v440_v8 }
 0x1a1   : > { %v450_v12 = vsub.f32 %v448_v10, %v449_v11 }
 0x1a3   : > { %v451_v13 = vadd.f32 1e-05, %v450_v12 }
 0x1a5   : > { %976 = vrsqrt.f32 %v451_v13 }
 0x1af   : > { %v977_v16 = vpop.eup %976 }
 0x1b0   : > { %v453_v17 = vmul.f32 %v977_v16, %v358_v55  ;;  %v592_v55 = vrot.slane %v488_v28, %v462_v15 }
 0x1b2   : > { %v458_v20 = vrot.slane %v453_v17, %v457_v14 }
 0x1b4   : > { %v459_v22 = vmul.f32 %v458_v20, %v454_v19 }
 0x1b6   : > { %v464_v24 = vadd.f32 %v463_v21, %v459_v22 }
 0x1b8   : > { %vm465_vm1 = vcmp.ge.f32.partialorder %v464_v24, 0.0  ;;  %v470_v25 = vmul.f32 %v469_v23, %v464_v24 }
 0x1ba   : > { %v471_v26 = vsel %vm465_vm1, %v464_v24, %v470_v25 }
 0x1bb   : > { %854 = vmatmul.mubr.f32.vlgmr.msra.gmra.mrb[0].mxu1 %v471_v26 }
 0x28e   : > { %v559_v30 = vpop.f32.mrb[0].mxu1 }
 0x28f   : > { %v560_v31 = vadd.f32 %v559_v30, %v492_v29  ;;  %v855_v32 = vpop.f32.mrb[1].mxu1 }
 0x291   : > { %v563_v33 = vrot.slane %v560_v31, 4  ;;  %v570_v34 = vmul.f32 %v560_v31, %v560_v31 }
 0x293   : > { %v564_v35 = vadd.f32 %v563_v33, %v560_v31  ;;  %v571_v36 = vrot.slane %v570_v34, 4 }
 0x295   : > { %v565_v37 = vrot.slane %v564_v35, 2  ;;  %v572_v38 = vadd.f32 %v571_v36, %v570_v34 }
 0x297   : > { %v566_v39 = vadd.f32 %v565_v37, %v564_v35  ;;  %v573_v40 = vrot.slane %v572_v38, 2 }
 0x299   : > { %v567_v41 = vrot.slane %v566_v39, 1  ;;  %v574_v42 = vadd.f32 %v573_v40, %v572_v38 }
 0x29b   : > { %v568_v43 = vadd.f32 %v567_v41, %v566_v39  ;;  %v575_v44 = vrot.slane %v574_v42, 1 }
 0x29d   : > { %v569_v45 = vmul.f32 0.125, %v568_v43  ;;  %v576_v46 = vadd.f32 %v575_v44, %v574_v42 }
 0x29f   : > { %v577_v47 = vmul.f32 0.125, %v576_v46  ;;  %v578_v48 = vmul.f32 %v569_v45, %v569_v45  ;;  %v583_v53 = vsub.f32 %v560_v31, %v569_v45 }
 0x2a1   : > { %v579_v49 = vsub.f32 %v577_v47, %v578_v48 }
 0x2a3   : > { %v580_v50 = vadd.f32 1e-05, %v579_v49 }
 0x2a5   : > { %978 = vrsqrt.f32 %v580_v50 }
 0x2af   : > { %v979_v51 = vpop.eup %978 }
 0x2b0   : > { %v582_v52 = vmul.f32 %v979_v51, %v488_v28 }
 0x2b2   : > { %v587_v54 = vrot.slane %v582_v52, %v457_v14 }
 0x2b4   : > { %v588_v56 = vmul.f32 %v587_v54, %v583_v53 }
 0x2b6   : > { %v593_v58 = vadd.f32 %v592_v55, %v588_v56 }
 0x2b8   : > { %vm594_vm2 = vcmp.ge.f32.partialorder %v593_v58, 0.0  ;;  %v599_v59 = vmul.f32 %v598_v57, %v593_v58 }
 0x2ba   : > { %v600_v60 = vsel %vm594_vm2, %v593_v58, %v599_v59 }
 0x2bb   : > { %v601_v61 = vadd.f32 %v600_v60, %v1467_v27 }
 0x2bd   : > { %602 = vst [vmem:[#allocation10] sm:$0xff] %v601_v61 }
 0x2be   : > { %1111 = shalt.err (!%p1108_p12)
}
 0x2bf   : > { %s1112_s1 = scalar_lea.hbm %s1543_s5, 128 }
 0x2c0   : > { %p1113_p10 = scmp.ne.s32.totalorder %s1543_s5, %s1112_s1  ;;  %p1118_p13 = scmp.lt.u32.totalorder %s1112_s1, %s1543_s5 }
 0x2c2   : > { %p1114_p2 = pnand %p1113_p10, %p935_p4 }
 0x2c4   : > { %p1115_p6 = pneg %p1114_p2 }
 0x2c6   : > { %p1120_p11 = pnand %p1118_p13, %p1115_p6 }
 0x2c8   : > { %1123 = shalt.err (!%p1120_p11)
}
 0x2c9   : > { %915 = dma.vmem_to_hbm [thread:$0]  (%p935_p4), %s611_s23, 128, %s1543_s5, [#allocation4]  }
 0x2ca   : > { %1153 = dma.done.wait (%p935_p4), [#allocation4], 128  }
 0x2cb   : > { %1155 = vsyncadd (%p935_p4), [#allocation4], 4294967168 }
 0x2cc PF: > { %p20_p0 = scmp.ge.s32.totalorder %s1233_s22, 5   ;;  %s1573_s18 = smov %s1162_s19 }
 0x2cd   : > { %s1574_s19 = smov %s1166_s20  ;;  %s1575_s20 = smov %s1243_s25 }
 0x2ce   : > { %s1576_s21 = smov %s1233_s22  ;;  %22 = sbr.rel (!%p20_p0) target bundleno = 9 (0x9), region = 113 }
 0x2d5   :  { %623 = vsyncpa [#allocation3], 1 }
 0x2d6   :  { %625 = vsyncpa [#allocation3 + $0x1], 1 }
 0x2d7   :  { %626 = vsyncpa [#allocation6], 1 }
 0x2d8   :  { %628 = vsyncpa [#allocation6 + $0x1], 1 }
 0x2d9   :  { %629 = vsyncpa [#allocation9], 1 }
 0x2da   :  { %631 = vsyncpa [#allocation9 + $0x1], 1 }
 0x2db   :  { %632 = vsyncpa [#allocation4], 1 }
 0x2dc   :  { %634 = vsyncpa [#allocation4 + $0x1], 1 }

</bundles_post_ra>
